<compile_context>
chip_gen: v7x
topology: tpu7x:2x2x1
jax: 0.10.0
libtpu: 0.0.40
codegen_flags: <defaults>
</compile_context>

<pallas_src>
import functools

import jax
import jax.numpy as jnp
from jax.experimental import pallas as pl
from jax.experimental.pallas import tpu as pltpu

# Candidate lane-dense slab widths (all multiples of 128). Widest divisor of
# the element count wins -> zero padding copies and wide unmasked stores.
_WIDTH_CANDIDATES = (8192, 4096, 2048, 1024, 512, 256, 128)
_PAD_FALLBACK_WIDTH = 1024               # used only when nothing above divides n
_TARGET_BLOCK_BYTES = 2 * 1024 * 1024    # ~2 MiB per block per array
_SMALL_INPUT_BYTES = 256 * 1024          # below this, plain JAX is faster


def _lambda_kernel(x_ref, o_ref, *, scale, shift):
    # Elementwise hot path: y = x * scale + shift   (pure VPU work)
    x = x_ref[...]
    s = jnp.asarray(scale, dtype=x.dtype)
    b = jnp.asarray(shift, dtype=x.dtype)
    o_ref[...] = x * s + b


def lambda_layer_forward(x, *, scale=2.0, shift=1.0, force_pallas=False):
    """Pallas implementation of LambdaLayer(lambda x, scale, shift: x*scale+shift)."""
    orig_shape = x.shape
    orig_dtype = x.dtype
    n = x.size
    itemsize = jnp.dtype(orig_dtype).itemsize

    if n == 0:
        return x

    # Small-input fast path: launch + DMA setup overhead dwarfs the work.
    if not force_pallas and n * itemsize < _SMALL_INPUT_BYTES:
        return x * jnp.asarray(scale, orig_dtype) + jnp.asarray(shift, orig_dtype)

    flat = x.reshape(-1)  # contiguous flatten: free bitcast reshape

    # Pick the widest lane-dense width that divides n -> zero pad / slice cost.
    width = None
    for w in _WIDTH_CANDIDATES:
        if n % w == 0:
            width = w
            break
    padded_n = n
    if width is None:
        # Ragged element count: pad once (remainder < width elements) so the
        # kernel itself still runs at full store width.
        width = _PAD_FALLBACK_WIDTH
        padded_n = ((n + width - 1) // width) * width
        flat = jnp.pad(flat, (0, padded_n - n))

    rows = padded_n // width
    x2d = flat.reshape(rows, width)  # free reshape of a contiguous 1-D array

    # Row tile: ~2 MiB blocks, multiple of 32 rows so sublanes stay fully
    # packed for f32 / bf16 / int8 alike.  Partial last block (masked stores on
    # one grid step only) is handled by Pallas.
    block_rows = _TARGET_BLOCK_BYTES // (width * itemsize)
    block_rows = max(32, (block_rows // 32) * 32)
    if block_rows >= rows:
        block_rows = rows  # full-extent block (exempt from (8,128) divisibility)
    grid = pl.cdiv(rows, block_rows)

    kernel = functools.partial(_lambda_kernel, scale=scale, shift=shift)

    out2d = pl.pallas_call(
        kernel,
        out_shape=jax.ShapeDtypeStruct((rows, width), orig_dtype),
        grid_spec=pltpu.PrefetchScalarGridSpec(
            num_scalar_prefetch=0,
            grid=(grid,),
            in_specs=[pl.BlockSpec((block_rows, width), lambda i: (i, 0))],
            out_specs=pl.BlockSpec((block_rows, width), lambda i: (i, 0)),
        ),
        compiler_params=pltpu.CompilerParams(
            # single grid axis is parallel -> shards across the 2 TCs on v7x.
            dimension_semantics=("parallel",),
            # 2 MiB blocks x 2 arrays x 2 buffers = 8 MiB; explicit headroom
            # (safe within v5e/v6e/v7x VMEM budgets).
            vmem_limit_bytes=32 * 1024 * 1024,
        ),
    )(x2d)

    out = out2d.reshape(-1)
    if padded_n != n:
        out = out[:n]
    return out.reshape(orig_shape)


class LambdaLayer:
    """JAX/Pallas analogue of the PyTorch LambdaLayer module."""

    def __init__(self, lambd, **kwargs):
        self.lambd = lambd
        self.kwargs = kwargs

    def __call__(self, x):
        return self.lambd(x, **self.kwargs)


if __name__ == "__main__":
    key = jax.random.PRNGKey(0)

    # Small NCHW input consistent with a typical conv-net feature map.
    x = jax.random.normal(key, (2, 4, 16, 16), dtype=jnp.float32)

    # 1) Force the Pallas path (the tensor is below the fast-path threshold)
    #    so the kernel itself is exercised.
    layer = LambdaLayer(lambda_layer_forward, scale=2.0, shift=1.0,
                        force_pallas=True)
    y = jax.block_until_ready(layer(x))
    ref = x * 2.0 + 1.0
    assert y.shape == x.shape and y.dtype == x.dtype
    assert jnp.allclose(y, ref, atol=1e-6), "mismatch vs reference (pallas path)"

    # 2) Ragged element count -> exercises the pad-once fallback path.
    key2 = jax.random.PRNGKey(0)
    x2 = jax.random.normal(key2, (2, 3, 7, 5), dtype=jnp.float32)  # 210 elems
    y2 = jax.block_until_ready(
        lambda_layer_forward(x2, scale=-0.5, shift=3.0, force_pallas=True))
    ref2 = x2 * -0.5 + 3.0
    assert y2.shape == x2.shape and y2.dtype == x2.dtype
    assert jnp.allclose(y2, ref2, atol=1e-6), "mismatch vs reference (ragged path)"

    # 3) bf16 input -> dtype preserved (no silent upcast from scale/shift).
    xb = x.astype(jnp.bfloat16)
    yb = jax.block_until_ready(
        lambda_layer_forward(xb, scale=2.0, shift=1.0, force_pallas=True))
    assert yb.dtype == jnp.bfloat16 and yb.shape == xb.shape
    assert jnp.allclose(yb.astype(jnp.float32),
                        (xb * jnp.bfloat16(2.0) + jnp.bfloat16(1.0)).astype(jnp.float32),
                        atol=1e-2), "mismatch vs reference (bf16 path)"

    # 4) Small-input fast path (plain JAX, no pallas_call).
    y3 = jax.block_until_ready(lambda_layer_forward(x, scale=2.0, shift=1.0))
    assert jnp.allclose(y3, ref, atol=1e-6), "mismatch vs reference (fast path)"

    print("KERNEL_OK")
</pallas_src>

<mosaic_0001>
module attributes {stable_mosaic.version = 11 : i64} {
  func.func @_lambda_kernel(%arg0: i32, %arg1: memref<1x2048xf32, #tpu.memory_space<vmem>>, %arg2: memref<1x2048xf32, #tpu.memory_space<vmem>>) attributes {dimension_semantics = [#tpu.dimension_semantics<parallel>], iteration_bounds = array<i64: 1>, scalar_prefetch = 0 : i64, scratch_operands = 0 : i64, tpu.core_type = #tpu.core_type<tc>, window_params = [{transform_indices = @transform_0, window_bounds = array<i64: 1, 2048>}, {transform_indices = @transform_1, window_bounds = array<i64: 1, 2048>}]} {
    %c0 = arith.constant 0 : index
    %c0_0 = arith.constant 0 : index
    %0 = vector.load %arg1[%c0, %c0_0] : memref<1x2048xf32, #tpu.memory_space<vmem>>, vector<1x2048xf32>
    %cst = arith.constant 2.000000e+00 : f32
    %1 = vector.broadcast %cst : f32 to vector<1x2048xf32>
    %2 = arith.mulf %0, %1 : vector<1x2048xf32>
    %cst_1 = arith.constant 1.000000e+00 : f32
    %3 = vector.broadcast %cst_1 : f32 to vector<1x2048xf32>
    %4 = arith.addf %2, %3 : vector<1x2048xf32>
    %c0_2 = arith.constant 0 : index
    %c0_3 = arith.constant 0 : index
    %5 = vector.load %arg2[%c0_2, %c0_3] : memref<1x2048xf32, #tpu.memory_space<vmem>>, vector<1x2048xf32>
    tpu.vector_store %arg2[%c0_2, %c0_3], %4 {strides = array<i32>} : memref<1x2048xf32, #tpu.memory_space<vmem>>, vector<1x2048xf32>,
    return
  }
  func.func @transform_0(%arg0: i32) -> (i32, i32) {
    %c0_i32 = arith.constant 0 : i32
    %c0_i32_0 = arith.constant 0 : i32
    return %arg0, %c0_i32 : i32, i32
  }
  func.func @transform_1(%arg0: i32) -> (i32, i32) {
    %c0_i32 = arith.constant 0 : i32
    %c0_i32_0 = arith.constant 0 : i32
    return %arg0, %c0_i32 : i32, i32
  }
}

</mosaic_0001>

<bundles_post_ra>
// kernel: tpu_custom_call.1
= control target key start
LH: loop header
LB: loop body
LE: loop exit
PB: predicated region body
PF: predicated region fallthrough
CT: control target
= control target key end

     0   :  { %6 = vsyncpa [#allocation3], 0  ;;  %s130_s0 = inlined_call_operand.hbm [shape: f32[1,2048], index: 0, kind: input, shape index: {}]   ;;  %s131_s1 = inlined_call_operand.hbm [shape: f32[1,2048], index: 1, kind: output, shape index: {}]  }
   0x1   :  { %7 = vsyncpa [#allocation4], 0  ;;  %s94_s6 = smov [#allocation2]   ;;  %s46_s10 = scalar_lea.hbm %s130_s0, 256 }
   0x2   :  { %s14_s7 = sshll.u32 %s94_s6, 4  ;;  %p47_p0 = scmp.ne.s32.totalorder %s130_s0, %s46_s10  ;;  %s15_s7 = int_to_ptr.vmem [resolvable:$true] %s14_s7 }
   0x3   :  { %p50_p1 = scmp.lt.u32.totalorder %s46_s10, %s130_s0 }
   0x5   :  { %p52_p2 = pnand %p50_p1, %p47_p0 }
   0x7   :  { %55 = shalt.err (!%p52_p2)
}
   0x8   :  { %s56_s15 = scalar_lea.vmem %s15_s7, 256  ;;  %p61_p4 = scmp.lt.s32.totalorder %s15_s7, %s15_s7 }
   0x9   :  { %p57_p3 = scmp.ne.s32.totalorder %s15_s7, %s56_s15  ;;  %p62_p5 = scmp.lt.s32.totalorder %s56_s15, %s56_s15 }
   0xb   :  { %p63_p6 = por %p62_p5, %p61_p4 }
   0xd   :  { %p64_p7 = pnand %p63_p6, %p57_p3 }
   0xf   :  { %67 = shalt.err (!%p64_p7)
}
  0x10   :  { %17 = dma.hbm_to_vmem [thread:$0]  %s130_s0, 256, %s15_s7, [#allocation3]  }
  0x11   :  { %90 = dma.done.wait [#allocation3], 256  }
  0x12   :  { %91 = vsyncadd [#allocation3], 4294967040  ;;  %v21_v0 = vld [vmem:[#allocation2] sm:$0xff]  ;;  %v22_v1 = vld [vmem:[#allocation2 + $0x8] sm:$0xff]  ;;  %s95_s18 = smov [#allocation5]  }
  0x13   :  { %s35_s19 = sshll.u32 %s95_s18, 4  ;;  %v23_v2 = vmul.f32 2.0, %v21_v0  ;;  %v24_v3 = vmul.f32 2.0, %v22_v1  ;;  %s36_s19 = int_to_ptr.vmem [resolvable:$true] %s35_s19 }
  0x14   :  { %s68_s20 = scalar_lea.vmem %s36_s19, 256  ;;  %p73_p9 = scmp.lt.s32.totalorder %s36_s19, %s36_s19 }
  0x15   :  { %v25_v4 = vadd.f32 1.0, %v23_v2  ;;  %v26_v5 = vadd.f32 1.0, %v24_v3  ;;  %p69_p8 = scmp.ne.s32.totalorder %s36_s19, %s68_s20  ;;  %p74_p10 = scmp.lt.s32.totalorder %s68_s20, %s68_s20 }
  0x17   :  { %27 = vst [vmem:[#allocation5] sm:$0xff] %v25_v4  ;;  %28 = vst [vmem:[#allocation5 + $0x8] sm:$0xff] %v26_v5  ;;  %p75_p11 = por %p74_p10, %p73_p9 }
  0x19   :  { %p76_p12 = pnand %p75_p11, %p69_p8 }
  0x1b   :  { %79 = shalt.err (!%p76_p12)
}
  0x1c   :  { %s80_s22 = scalar_lea.hbm %s131_s1, 256 }
  0x1d   :  { %p81_p13 = scmp.ne.s32.totalorder %s131_s1, %s80_s22  ;;  %p84_p0 = scmp.lt.u32.totalorder %s80_s22, %s131_s1 }
  0x1f   :  { %p86_p1 = pnand %p84_p0, %p81_p13 }
  0x21   :  { %89 = shalt.err (!%p86_p1)
}
  0x22   :  { %38 = dma.vmem_to_hbm [thread:$0]  %s36_s19, 256, %s131_s1, [#allocation4]  }
  0x23   :  { %92 = dma.done.wait [#allocation4], 256  }
  0x24   :  { %93 = vsyncadd [#allocation4], 4294967040 }
  0x25   :  { %42 = vsyncpa [#allocation3], 1 }
  0x26   :  { %43 = vsyncpa [#allocation4], 1 }

</bundles_post_ra>
